<compile_context>
chip_gen: v5e
topology: v5e:2x2
jax: 0.10.0
libtpu: 0.0.40
codegen_flags: <defaults>
</compile_context>

<pallas_src>
import math
from functools import partial

import jax
import jax.numpy as jnp
from jax import lax
from jax.experimental import pallas as pl
from jax.experimental.pallas import tpu as pltpu

_INV_SQRT2 = 1.0 / math.sqrt(2.0)


def _round_up(x, m):
    return ((x + m - 1) // m) * m


def _cdiv(a, b):
    return -(-a // b)


def _sublane(dtype):
    # Minimum sublane tile multiple per dtype packing (f32:8, bf16:16, int8/fp8:32).
    nbytes = jnp.dtype(dtype).itemsize
    return {4: 8, 2: 16, 1: 32}.get(nbytes, 8)


def _mlp_kernel(x_ref, w1_ref, b1_ref, w2_ref, b2_ref, o_ref, acc_ref, *, gelu_approx):
    # x_ref: (TM, Cp), w1_ref: (Cp, TH), b1_ref: (1, TH),
    # w2_ref: (TH, Op), b2_ref: (1, Op), o_ref: (TM, Op), acc_ref: (TM, Op) f32
    h_idx = pl.program_id(1)

    @pl.when(h_idx == 0)
    def _init():
        acc_ref[...] = jnp.broadcast_to(
            b2_ref[...].astype(jnp.float32), acc_ref.shape)

    # fc1 partial product on the MXU, f32 accumulation.
    h = jnp.dot(x_ref[...], w1_ref[...], preferred_element_type=jnp.float32)
    h = h + b1_ref[...].astype(jnp.float32)

    if gelu_approx:
        # tanh-form GELU -> EUP slot (co-issued, nearly free next to the MXU).
        h = jax.nn.gelu(h, approximate=True)
    else:
        # Exact GELU; matches torch.nn.GELU() default (approximate='none').
        h = 0.5 * h * (1.0 + lax.erf(h * _INV_SQRT2))

    # fc2 partial product, accumulated across hidden tiles.
    acc_ref[...] += jnp.dot(h.astype(w2_ref.dtype), w2_ref[...],
                            preferred_element_type=jnp.float32)

    @pl.when(h_idx == pl.num_programs(1) - 1)
    def _store():
        o_ref[...] = acc_ref[...].astype(o_ref.dtype)


def mlp_pallas(x, w1, b1, w2, b2, *, compute_dtype=None, gelu_approximate=False,
               tm_max=512, th_max=512):
    """x: (B, N, C). w1: (C, H), b1: (H,), w2: (H, O), b2: (O,).

    Weights are stored (in, out); PyTorch's nn.Linear stores (out, in) — transpose
    at parameter-conversion time. compute_dtype (e.g. jnp.bfloat16) sets the MXU
    input dtype; accumulation is always f32.
    """
    B, N, C = x.shape
    Cw, H = w1.shape
    Hw, O = w2.shape
    assert Cw == C and Hw == H and b1.shape == (H,) and b2.shape == (O,)

    out_dtype = x.dtype
    cdtype = jnp.dtype(compute_dtype) if compute_dtype is not None else jnp.dtype(x.dtype)

    M = B * N
    sub = _sublane(cdtype)

    # --- adaptive row tiling: minimize zero-row padding, >=2 tiles for megacore ---
    n_row = max(_cdiv(M, tm_max), 2 if M > sub else 1)
    TM = min(_round_up(_cdiv(M, n_row), sub), _round_up(M, sub))
    n_row = _cdiv(M, TM)
    Mp = n_row * TM

    # --- lane-dense channel padding (zero columns/rows; exact) ---
    Cp = _round_up(C, 128)
    Op = _round_up(O, 128)

    # --- hidden-dim tiling: VMEM use independent of H ---
    Hp0 = _round_up(H, 128)
    n_h = _cdiv(Hp0, th_max)
    TH = _round_up(_cdiv(Hp0, n_h), 128)
    Hp = n_h * TH

    x2d = x.reshape(M, C).astype(cdtype)
    x2d = jnp.pad(x2d, ((0, Mp - M), (0, Cp - C)))

    w1p = jnp.pad(w1.astype(cdtype), ((0, Cp - C), (0, Hp - H)))
    w2p = jnp.pad(w2.astype(cdtype), ((0, Hp - H), (0, Op - O)))
    b1p = jnp.pad(b1.astype(jnp.float32), ((0, Hp - H),)).reshape(1, Hp)
    b2p = jnp.pad(b2.astype(jnp.float32), ((0, Op - O),)).reshape(1, Op)

    cbytes = cdtype.itemsize
    obytes = jnp.dtype(out_dtype).itemsize

    # --- VMEM budget: double-buffered I/O tiles + f32 accumulator scratch ---
    need = (2 * (TM * Cp * cbytes      # x tiles
                 + Cp * TH * cbytes    # w1 tiles
                 + TH * 4              # b1 (f32)
                 + TH * Op * cbytes    # w2 tiles
                 + Op * 4              # b2 (f32)
                 + TM * Op * obytes)   # out tiles
            + TM * Op * 4)             # accumulator
    try:
        cap = int(getattr(pltpu.get_tpu_info(), "vmem_capacity_bytes", 64 << 20))
    except Exception:
        cap = 64 << 20
    vmem_limit = int(max(32 << 20, min(need + (16 << 20), cap - (8 << 20))))

    cost = pl.CostEstimate(
        flops=2 * Mp * Cp * Hp + 2 * Mp * Hp * Op,
        transcendentals=(Mp * Hp) if gelu_approximate else 0,  # erf is a VALU polynomial
        bytes_accessed=(Mp * Cp + Cp * Hp + Hp * Op) * cbytes
                       + (Hp + Op) * 4 + Mp * Op * obytes,
    )

    kernel = partial(_mlp_kernel, gelu_approx=bool(gelu_approximate))

    out2d = pl.pallas_call(
        kernel,
        out_shape=jax.ShapeDtypeStruct((Mp, Op), out_dtype),
        grid_spec=pltpu.PrefetchScalarGridSpec(
            num_scalar_prefetch=0,
            grid=(n_row, n_h),
            in_specs=[
                pl.BlockSpec((TM, Cp), lambda i, h: (i, 0)),   # activations (fetched once per row tile)
                pl.BlockSpec((Cp, TH), lambda i, h: (0, h)),   # w1 hidden tiles (streamed)
                pl.BlockSpec((1, TH), lambda i, h: (0, h)),    # b1 hidden tiles
                pl.BlockSpec((TH, Op), lambda i, h: (h, 0)),   # w2 hidden tiles (streamed)
                pl.BlockSpec((1, Op), lambda i, h: (0, 0)),    # b2 (tiny, constant)
            ],
            out_specs=pl.BlockSpec((TM, Op), lambda i, h: (i, 0)),
            scratch_shapes=[pltpu.VMEM((TM, Op), jnp.float32)],
        ),
        compiler_params=pltpu.CompilerParams(
            dimension_semantics=("parallel", "arbitrary"),
            vmem_limit_bytes=vmem_limit,
        ),
        cost_estimate=cost,
    )(x2d, w1p, b1p, w2p, b2p)

    return out2d[:M, :O].reshape(B, N, O)


def _reference_mlp(x, w1, b1, w2, b2, approximate=False):
    h = jnp.einsum("bnc,ch->bnh", x, w1) + b1
    h = jax.nn.gelu(h, approximate=approximate)
    y = jnp.einsum("bnh,ho->bno", h, w2) + b2
    return y


if __name__ == "__main__":
    key = jax.random.PRNGKey(0)

    def make_case(k, B, N, C, H, O):
        kx, kw1, kb1, kw2, kb2 = jax.random.split(k, 5)
        x = jax.random.normal(kx, (B, N, C), dtype=jnp.float32)
        w1 = jax.random.normal(kw1, (C, H), dtype=jnp.float32) * (1.0 / math.sqrt(C))
        b1 = jax.random.normal(kb1, (H,), dtype=jnp.float32) * 0.01
        w2 = jax.random.normal(kw2, (H, O), dtype=jnp.float32) * (1.0 / math.sqrt(H))
        b2 = jax.random.normal(kb2, (O,), dtype=jnp.float32) * 0.01
        return x, w1, b1, w2, b2

    k1, k2 = jax.random.split(key)

    # Case 1: tiny Swin-like Mlp, exact f32 path (matches torch defaults).
    B, N, C = 2, 8, 32
    x, w1, b1, w2, b2 = make_case(k1, B, N, C, 4 * C, C)
    out = jax.block_until_ready(mlp_pallas(x, w1, b1, w2, b2))
    ref = _reference_mlp(x, w1, b1, w2, b2)
    assert out.shape == (B, N, C)
    assert jnp.allclose(out, ref, atol=2e-4, rtol=2e-4), (
        float(jnp.max(jnp.abs(out - ref))))

    # Case 2: non-multiple-of-128 channels (C=96), row padding (49 tokens/window),
    # and multiple hidden tiles (th_max=128 -> 3 H-tiles through the accumulator).
    B, N, C = 2, 49, 96
    x, w1, b1, w2, b2 = make_case(k2, B, N, C, 4 * C, C)
    out = jax.block_until_ready(mlp_pallas(x, w1, b1, w2, b2, th_max=128))
    ref = _reference_mlp(x, w1, b1, w2, b2)
    assert out.shape == (B, N, C)
    assert jnp.allclose(out, ref, atol=2e-4, rtol=2e-4), (
        float(jnp.max(jnp.abs(out - ref))))

    # Case 3: perf path — bf16 MXU inputs + tanh-form GELU (EUP). Looser tolerance
    # vs the f32 reference with matching tanh GELU.
    out_bf16 = jax.block_until_ready(
        mlp_pallas(x, w1, b1, w2, b2,
                   compute_dtype=jnp.bfloat16, gelu_approximate=True, th_max=128))
    ref_approx = _reference_mlp(x, w1, b1, w2, b2, approximate=True)
    assert jnp.allclose(out_bf16, ref_approx, atol=5e-2, rtol=5e-2), (
        float(jnp.max(jnp.abs(out_bf16 - ref_approx))))

    print("KERNEL_OK")
</pallas_src>

<mosaic_0001>
module attributes {stable_mosaic.version = 11 : i64} {
  func.func @_mlp_kernel(%arg0: i32, %arg1: i32, %arg2: memref<8x128xf32, #tpu.memory_space<vmem>>, %arg3: memref<128x128xf32, #tpu.memory_space<vmem>>, %arg4: memref<1x128xf32, #tpu.memory_space<vmem>>, %arg5: memref<128x128xf32, #tpu.memory_space<vmem>>, %arg6: memref<1x128xf32, #tpu.memory_space<vmem>>, %arg7: memref<8x128xf32, #tpu.memory_space<vmem>>, %arg8: memref<8x128xf32, #tpu.memory_space<vmem>>) attributes {dimension_semantics = [#tpu.dimension_semantics<parallel>, #tpu.dimension_semantics<arbitrary>], iteration_bounds = array<i64: 2, 1>, scalar_prefetch = 0 : i64, scratch_operands = 1 : i64, tpu.core_type = #tpu.core_type<tc>, window_params = [{transform_indices = @transform_0, window_bounds = array<i64: 8, 128>}, {transform_indices = @transform_1, window_bounds = array<i64: 128, 128>}, {transform_indices = @transform_2, window_bounds = array<i64: 1, 128>}, {transform_indices = @transform_3, window_bounds = array<i64: 128, 128>}, {pipeline_mode = #tpu.pipeline_mode<synchronous>, transform_indices = @transform_4, window_bounds = array<i64: 1, 128>}, {transform_indices = @transform_5, window_bounds = array<i64: 8, 128>}]} {
    %c0_i32 = arith.constant 0 : i32
    %0 = arith.cmpi eq, %arg1, %c0_i32 : i32
    %1 = arith.extui %0 : i1 to i32
    %c0_i32_0 = arith.constant 0 : i32
    %2 = arith.cmpi ne, %1, %c0_i32_0 : i32
    scf.if %2 {
      %c0_18 = arith.constant 0 : index
      %c0_19 = arith.constant 0 : index
      %25 = vector.load %arg6[%c0_18, %c0_19] : memref<1x128xf32, #tpu.memory_space<vmem>>, vector<1x128xf32>
      %26 = vector.shape_cast %25 : vector<1x128xf32> to vector<1x128xf32>
      %27 = vector.broadcast %26 : vector<1x128xf32> to vector<8x128xf32>
      %c0_20 = arith.constant 0 : index
      %c0_21 = arith.constant 0 : index
      %28 = vector.load %arg8[%c0_20, %c0_21] : memref<8x128xf32, #tpu.memory_space<vmem>>, vector<8x128xf32>
      tpu.vector_store %arg8[%c0_20, %c0_21], %27 {strides = array<i32>} : memref<8x128xf32, #tpu.memory_space<vmem>>, vector<8x128xf32>,
    } else {
    }
    %c0 = arith.constant 0 : index
    %c0_1 = arith.constant 0 : index
    %3 = vector.load %arg2[%c0, %c0_1] : memref<8x128xf32, #tpu.memory_space<vmem>>, vector<8x128xf32>
    %c0_2 = arith.constant 0 : index
    %c0_3 = arith.constant 0 : index
    %4 = vector.load %arg3[%c0_2, %c0_3] : memref<128x128xf32, #tpu.memory_space<vmem>>, vector<128x128xf32>
    %cst = arith.constant dense<0.000000e+00> : vector<8x128xf32>
    %5 = tpu.matmul %3, %4, %cst {dimension_numbers = #tpu.dot_dimension_numbers<[1], [0], [0], [1], [0, 0, 1, 1], [], []>} : vector<8x128xf32>, vector<128x128xf32>, vector<8x128xf32> -> vector<8x128xf32>
    %c0_4 = arith.constant 0 : index
    %c0_5 = arith.constant 0 : index
    %6 = vector.load %arg4[%c0_4, %c0_5] : memref<1x128xf32, #tpu.memory_space<vmem>>, vector<1x128xf32>
    %7 = vector.broadcast %6 : vector<1x128xf32> to vector<8x128xf32>
    %8 = arith.addf %5, %7 : vector<8x128xf32>
    %cst_6 = arith.constant 5.000000e-01 : f32
    %9 = vector.broadcast %cst_6 : f32 to vector<8x128xf32>
    %10 = arith.mulf %9, %8 : vector<8x128xf32>
    %cst_7 = arith.constant 0.707106769 : f32
    %11 = vector.broadcast %cst_7 : f32 to vector<8x128xf32>
    %12 = arith.mulf %8, %11 : vector<8x128xf32>
    %13 = math.erf %12 : vector<8x128xf32>
    %cst_8 = arith.constant 1.000000e+00 : f32
    %14 = vector.broadcast %cst_8 : f32 to vector<8x128xf32>
    %15 = arith.addf %14, %13 : vector<8x128xf32>
    %16 = arith.mulf %10, %15 : vector<8x128xf32>
    %c0_9 = arith.constant 0 : index
    %c0_10 = arith.constant 0 : index
    %17 = vector.load %arg8[%c0_9, %c0_10] : memref<8x128xf32, #tpu.memory_space<vmem>>, vector<8x128xf32>
    %c0_11 = arith.constant 0 : index
    %c0_12 = arith.constant 0 : index
    %18 = vector.load %arg5[%c0_11, %c0_12] : memref<128x128xf32, #tpu.memory_space<vmem>>, vector<128x128xf32>
    %cst_13 = arith.constant dense<0.000000e+00> : vector<8x128xf32>
    %19 = tpu.matmul %16, %18, %cst_13 {dimension_numbers = #tpu.dot_dimension_numbers<[1], [0], [0], [1], [0, 0, 1, 1], [], []>} : vector<8x128xf32>, vector<128x128xf32>, vector<8x128xf32> -> vector<8x128xf32>
    %20 = arith.addf %17, %19 : vector<8x128xf32>
    %c0_14 = arith.constant 0 : index
    %c0_15 = arith.constant 0 : index
    %21 = vector.load %arg8[%c0_14, %c0_15] : memref<8x128xf32, #tpu.memory_space<vmem>>, vector<8x128xf32>
    tpu.vector_store %arg8[%c0_14, %c0_15], %20 {strides = array<i32>} : memref<8x128xf32, #tpu.memory_space<vmem>>, vector<8x128xf32>,
    %c0_i32_16 = arith.constant 0 : i32
    %22 = arith.cmpi eq, %arg1, %c0_i32_16 : i32
    %23 = arith.extui %22 : i1 to i32
    %c0_i32_17 = arith.constant 0 : i32
    %24 = arith.cmpi ne, %23, %c0_i32_17 : i32
    scf.if %24 {
      %c0_18 = arith.constant 0 : index
      %c0_19 = arith.constant 0 : index
      %25 = vector.load %arg8[%c0_18, %c0_19] : memref<8x128xf32, #tpu.memory_space<vmem>>, vector<8x128xf32>
      %c0_20 = arith.constant 0 : index
      %c0_21 = arith.constant 0 : index
      %26 = vector.load %arg7[%c0_20, %c0_21] : memref<8x128xf32, #tpu.memory_space<vmem>>, vector<8x128xf32>
      tpu.vector_store %arg7[%c0_20, %c0_21], %25 {strides = array<i32>} : memref<8x128xf32, #tpu.memory_space<vmem>>, vector<8x128xf32>,
    } else {
    }
    return
  }
  func.func @transform_0(%arg0: i32, %arg1: i32) -> (i32, i32) {
    %c0_i32 = arith.constant 0 : i32
    %c0_i32_0 = arith.constant 0 : i32
    return %arg0, %c0_i32 : i32, i32
  }
  func.func @transform_1(%arg0: i32, %arg1: i32) -> (i32, i32) {
    %c0_i32 = arith.constant 0 : i32
    %c0_i32_0 = arith.constant 0 : i32
    return %c0_i32, %arg1 : i32, i32
  }
  func.func @transform_2(%arg0: i32, %arg1: i32) -> (i32, i32) {
    %c0_i32 = arith.constant 0 : i32
    %c0_i32_0 = arith.constant 0 : i32
    return %c0_i32, %arg1 : i32, i32
  }
  func.func @transform_3(%arg0: i32, %arg1: i32) -> (i32, i32) {
    %c0_i32 = arith.constant 0 : i32
    %c0_i32_0 = arith.constant 0 : i32
    return %arg1, %c0_i32 : i32, i32
  }
  func.func @transform_4(%arg0: i32, %arg1: i32) -> (i32, i32) {
    %c0_i32 = arith.constant 0 : i32
    %c0_i32_0 = arith.constant 0 : i32
    %c0_i32_1 = arith.constant 0 : i32
    return %c0_i32, %c0_i32_0 : i32, i32
  }
  func.func @transform_5(%arg0: i32, %arg1: i32) -> (i32, i32) {
    %c0_i32 = arith.constant 0 : i32
    %c0_i32_0 = arith.constant 0 : i32
    return %arg0, %c0_i32 : i32, i32
  }
}

</mosaic_0001>

<bundles_post_ra>
// kernel: tpu_custom_call.1
= control target key start
LH: loop header
LB: loop body
LE: loop exit
PB: predicated region body
PF: predicated region fallthrough
CT: control target
= control target key end

     0   :  { %10 = vsyncpa [#allocation4], 0  ;;  %s1061_s0 = inlined_call_operand.hbm [shape: f32[16,128], index: 0, kind: input, shape index: {}]   ;;  %s1062_s1 = inlined_call_operand.hbm [shape: f32[128,128], index: 1, kind: input, shape index: {}]   ;;  %s1063_s2 = inlined_call_operand.vmem [shape: f32[1,128], index: 2, kind: input, shape index: {}]   ;;  %s1064_s3 = inlined_call_operand.hbm [shape: f32[128,128], index: 3, kind: input, shape index: {}]   ;;  %s1065_s4 = inlined_call_operand.vmem [shape: f32[1,128], index: 4, kind: input, shape index: {}]   ;;  %s1066_s5 = inlined_call_operand.hbm [shape: f32[16,128], index: 5, kind: output, shape index: {}]  }
   0x1   :  { %12 = vsyncpa [#allocation4 + $0x1], 0 }
   0x2   :  { %13 = vsyncpa [#allocation7], 0 }
   0x3   :  { %14 = vsyncpa [#allocation5], 0 }
   0x4   :  { %16 = vsyncpa [#allocation5 + $0x1], 0  ;;  %s904_s18 = smov 0   ;;  %s906_s19 = smov 0  }
   0x5   :  { %s908_s20 = smov 0   ;;  %s910_s21 = smov 0  }
   0x6   :  { %s912_s22 = smov 0   ;;  %s914_s23 = smov 0  }
   0x7 LB: > { %s584_s24 = sadd.s32 4294967295, %s868_s23   ;;  %p586_p0 = scmp.ge.s32.totalorder %s868_s23, 1  ;;  %s868_s23 = sphi %s914_s23, %s22_s23   ;;  %s864_s22 = sphi %s912_s22, %s1076_s22   ;;  %s860_s21 = sphi %s910_s21, %s1075_s21   ;;  %s856_s20 = sphi %s908_s20, %s1074_s20   ;;  %s852_s19 = sphi %s906_s19, %s1073_s19   ;;  %s848_s18 = sphi %s904_s18, %s1072_s18  }
   0x8   : > { %p938_p1 = scmp.eq.s32.totalorder %s584_s24, 0  ;;  %p190_p2 = scmp.lt.s32.totalorder %s868_s23, 3 }
   0x9   : > { %s203_s28 = sshll.u32 %s1062_s1, 4  ;;  %s870_s30 = smov [#allocation6]   ;;  %s204_s28 = int_to_ptr.hbm [resolvable:$true] %s203_s28 }
   0xa   : > { %p946_p3 = pnand %p586_p0, %p190_p2  ;;  %s205_s6 = sshll.u32 %s870_s30, 4  ;;  %s206_s6 = int_to_ptr.vmem [resolvable:$true] %s205_s6 }
   0xb   : > { %p590_p6 = scmp.ge.s32.totalorder %s868_s23, 2  ;;  %s226_s9 = sshll.u32 %s1064_s3, 4  ;;  %s227_s9 = int_to_ptr.hbm [resolvable:$true] %s226_s9 }
   0xc   : > { %p615_p4 = pneg %p946_p3  ;;  %s871_s10 = smov 128  }
   0xd   : > { %s872_s11 = smov 8   ;;  %s873_s12 = smov [#allocation8]  }
   0xe   : > { %p616_p5 = pnand %p615_p4, %p938_p1  ;;  %s228_s13 = sshll.u32 %s873_s12, 4  ;;  %s229_s13 = int_to_ptr.vmem [resolvable:$true] %s228_s13 }
   0xf   : > { %s34_s14 = sadd.s32 1, %s864_s22  ;;  %s585_s15 = sadd.s32 4294967294, %s868_s23  }
  0x10   : > { %618 = dma.hbm_to_vmem [thread:$0]  (!%p616_p5), %s204_s28, 2048, %s206_s6, [#allocation7], %s871_s10, %s871_s10, %s872_s11  }
  0x11   : > { %621 = dma.hbm_to_vmem [thread:$0]  (!%p616_p5), %s227_s9, 2048, %s229_s13, [#allocation7], %s871_s10, %s871_s10, %s872_s11  }
  0x12   : > { %p36_p7 = scmp.ge.s32.totalorder %s34_s14, 2  ;;  %s41_s16 = sadd.s32 1, %s856_s20 }
  0x13   : > { %p48_p8 = scmp.ne.s32.totalorder %s856_s20, %s852_s19  ;;  %p49_p9 = scmp.eq.s32.totalorder %s868_s23, 0 }
  0x14   : > { %s1078_s14 = smov (%p36_p7, %s34_s14), 0  ;;  %p54_p10 = scmp.ne.s32.totalorder %s852_s19, %s848_s18 }
  0x15   : > { %s38_s17 = ssub.s32 %s864_s22, %s1078_s14  ;;  %p177_p11 = scmp.eq.s32.totalorder %s584_s24, 1 }
  0x16   : > { %p39_p12 = scmp.eq.s32.totalorder %s38_s17, 0  ;;  %p974_p13 = por %p938_p1, %p54_p10 }
  0x17   : > { %p978_p0 = por %p177_p11, %p48_p8  ;;  %p183_p2 = scmp.eq.s32.totalorder %s585_s15, 1 }
  0x18   : > { %s983_s28 = scalar_select %p39_p12, %s856_s20, %s41_s16  }
  0x19   : > { %p50_p4 = por %p49_p9, %p48_p8  ;;  %p985_p5 = por %p183_p2, %p54_p10 }
  0x1a   : > { %s245_s6 = sand.u32 1, %s856_s20   ;;  %s592_s24 = sshll.u32 %s864_s22, 3 }
  0x1b   : > { %p632_p7 = scmp.lt.s32.totalorder %s868_s23, 2  ;;  %s591_s7 = sshll.u32 %s245_s6, 3 }
  0x1c   : > { %s253_s10 = scalar_lea.hbm %s1061_s0, %s592_s24  ;;  %s249_s12 = scalar_lea.vmem [#allocation3], %s591_s7 }
  0x1d   : > { %s255_s11 = sshll.u32 %s253_s10, 4  ;;  %s257_s13 = sshll.u32 %s249_s12, 4  ;;  %s256_s11 = int_to_ptr.hbm [resolvable:$true] %s255_s11  ;;  %s258_s13 = int_to_ptr.vmem [resolvable:$true] %s257_s13 }
  0x1e   : > { %p623_p11 = pnand %p632_p7, %p50_p4  ;;  %s246_s15 = scalar_lea.sflag [#allocation4], %s245_s6 }
  0x1f   : > { %266 = sbr.rel (%p946_p3) target bundleno = 381 (0x17d), region = 40  ;;  %s998_s16 = sand.u32 (!%p946_p3), 1, %s852_s19  }
  0x20   : > { %625 = dma.hbm_to_vmem [thread:$0]  (!%p623_p11), %s256_s11, 128, %s258_s13, %s246_s15  }
  0x21   : > { %s594_s17 = sshll.u32 (!%p946_p3), %s998_s16, 3  ;;  %s269_s24 = scalar_lea.sflag (!%p946_p3), [#allocation4], %s998_s16 }
  0x22   : > { %s1004_s7 = scalar_lea.vmem (!%p946_p3), [#allocation3], %s594_s17 }
  0x24   : > { %835 = dma.done.wait (%p974_p13), %s269_s24, 128  }
  0x25   : > { %837 = vsyncadd (%p974_p13), %s269_s24, 4294967168 }
  0x26   : > { %839 = dma.done.wait (%p938_p1), [#allocation7], 4096  }
  0x27   : > { %841 = vsyncadd (%p938_p1), [#allocation7], 4294963200  ;;  %v342_v0 = vld [vmem:[#allocation6 + $0x78] sm:$0xff]  ;;  %v341_v1 = vld [vmem:[#allocation6 + $0x70] sm:$0xff]  ;;  %s600_s26 = sshll.u32 %s860_s21, 3  ;;  %s312_s12 = scalar_lea.vmem [#allocation9], %s594_s17 }
  0x28   : > { %347 = vmatpush.msra.mxu0 %v342_v0  ;;  %v340_v2 = vld [vmem:[#allocation6 + $0x68] sm:$0xff]  ;;  %v339_v3 = vld [vmem:[#allocation6 + $0x60] sm:$0xff]  ;;  %v338_v4 = vld [vmem:[#allocation6 + $0x58] sm:$0xff]  ;;  %s466_s9 = scalar_lea.hbm %s1066_s5, %s600_s26  ;;  %s468_s13 = sshll.u32 %s312_s12, 4  ;;  %s469_s13 = int_to_ptr.vmem [resolvable:$true] %s468_s13 }
  0x29   : > { %v337_v5 = vld [vmem:[#allocation6 + $0x50] sm:$0xff]  ;;  %v336_v6 = vld [vmem:[#allocation6 + $0x48] sm:$0xff]  ;;  %v335_v7 = vld [vmem:[#allocation6 + $0x40] sm:$0xff]  ;;  %s470_s15 = sshll.u32 %s466_s9, 4  ;;  %s456_s24 = scalar_lea.sflag [#allocation5], %s998_s16  ;;  %s471_s15 = int_to_ptr.hbm [resolvable:$true] %s470_s15 }
  0x2a   : > { %348 = vmatpush.msra.mxu0 %v341_v1  ;;  %v334_v8 = vld [vmem:[#allocation6 + $0x38] sm:$0xff]  ;;  %v333_v9 = vld [vmem:[#allocation6 + $0x30] sm:$0xff]  ;;  %v332_v10 = vld [vmem:[#allocation6 + $0x28] sm:$0xff]  ;;  %s796_s21 = sshra.s32 %s471_s15, 4  ;;  %s802_s26 = scalar_lea.hbm %s1066_s5, 16  ;;  %s797_s21 = int_to_ptr.hbm [resolvable:$true] %s796_s21 }
  0x2b   : > { %v331_v11 = vld [vmem:[#allocation6 + $0x20] sm:$0xff]  ;;  %v330_v12 = vld [vmem:[#allocation6 + $0x18] sm:$0xff]  ;;  %v329_v13 = vld [vmem:[#allocation6 + $0x10] sm:$0xff]  ;;  %p803_p9 = scmp.lt.s32.totalorder %s797_s21, %s1066_s5 }
  0x2c   : > { %349 = vmatpush.msra.mxu0 %v340_v2  ;;  %v328_v14 = vld [vmem:[#allocation6 + $0x8] sm:$0xff]  ;;  %v327_v15 = vld [vmem:[#allocation6] sm:$0xff]  ;;  %v326_v16 = vld [vmem:[%s1004_s7] sm:$0xff]  ;;  %s798_s7 = scalar_lea.hbm %s797_s21, 8 }
  0x2d   : > { %v427_v17 = vld [vmem:[#allocation8 + $0x78] sm:$0xff]  ;;  %v426_v18 = vld [vmem:[#allocation8 + $0x70] sm:$0xff]  ;;  %v425_v19 = vld [vmem:[#allocation8 + $0x68] sm:$0xff]  ;;  %p799_p1 = scmp.ne.s32.totalorder %s797_s21, %s798_s7  ;;  %p804_p10 = scmp.lt.s32.totalorder %s802_s26, %s798_s7 }
  0x2e   : > { %350 = vmatpush.msra.mxu0 %v339_v3  ;;  %428 = vmatpush.msra.mxu1 %v427_v17  ;;  %v424_v20 = vld [vmem:[#allocation8 + $0x60] sm:$0xff]  ;;  %v688_v21 = vld [vmem:[%s1063_s2] ss:$0 sm:$0xff]  ;;  %v423_v22 = vld [vmem:[#allocation8 + $0x58] sm:$0xff] }
  0x2f   : > { %v422_v23 = vld [vmem:[#allocation8 + $0x50] sm:$0xff]  ;;  %v421_v25 = vld [vmem:[#allocation8 + $0x48] sm:$0xff]  ;;  %v420_v27 = vld [vmem:[#allocation8 + $0x40] sm:$0xff]  ;;  %p800_p3 = pnand %p799_p1, %p978_p0  ;;  %p805_p12 = por %p804_p10, %p803_p9 }
  0x30   : > { %351 = vmatpush.msra.mxu0 %v338_v4  ;;  %429 = vmatpush.msra.mxu1 %v426_v18  ;;  %v419_v29 = vld [vmem:[#allocation8 + $0x38] sm:$0xff]  ;;  %v418_v31 = vld [vmem:[#allocation8 + $0x30] sm:$0xff]  ;;  %v417_v33 = vld [vmem:[#allocation8 + $0x28] sm:$0xff] }
  0x31   : > { %v416_v36 = vld [vmem:[#allocation8 + $0x20] sm:$0xff]  ;;  %v415_v39 = vld [vmem:[#allocation8 + $0x18] sm:$0xff]  ;;  %v414_v42 = vld [vmem:[#allocation8 + $0x10] sm:$0xff]  ;;  %p801_p8 = pneg %p800_p3 }
  0x32   : > { %352 = vmatpush.msra.mxu0 %v337_v5  ;;  %430 = vmatpush.msra.mxu1 %v425_v19  ;;  %v413_v45 = vld [vmem:[#allocation8 + $0x8] sm:$0xff]  ;;  %v412_v47 = vld [vmem:[#allocation8] sm:$0xff] }
  0x33   : > { %p806_p13 = pnand %p805_p12, %p801_p8 }
  0x34   : > { %353 = vmatpush.msra.mxu0 %v336_v6  ;;  %431 = vmatpush.msra.mxu1 %v424_v20 }
  0x36   : > { %354 = vmatpush.msra.mxu0 %v335_v7  ;;  %432 = vmatpush.msra.mxu1 %v423_v22 }
  0x38   : > { %355 = vmatpush.msra.mxu0 %v334_v8  ;;  %433 = vmatpush.msra.mxu1 %v422_v23 }
  0x3a   : > { %356 = vmatpush.msra.mxu0 %v333_v9  ;;  %434 = vmatpush.msra.mxu1 %v421_v25 }
  0x3c   : > { %357 = vmatpush.msra.mxu0 %v332_v10  ;;  %435 = vmatpush.msra.mxu1 %v420_v27 }
  0x3e   : > { %358 = vmatpush.msra.mxu0 %v331_v11  ;;  %436 = vmatpush.msra.mxu1 %v419_v29  ;;  %v689_v11 = vld [vmem:[%s1065_s4] ss:$0 sm:$0xff] }
  0x40   : > { %359 = vmatpush.msra.mxu0 %v330_v12  ;;  %437 = vmatpush.msra.mxu1 %v418_v31 }
  0x42   : > { %360 = vmatpush.msra.mxu0 %v329_v13  ;;  %438 = vmatpush.msra.mxu1 %v417_v33 }
  0x44   : > { %361 = vmatpush.msra.mxu0 %v328_v14  ;;  %439 = vmatpush.msra.mxu1 %v416_v36 }
  0x46   : > { %362 = vmatpush.msra.mxu0 %v327_v15  ;;  %440 = vmatpush.msra.mxu1 %v415_v39 }
  0x47   : > { %363 = vmatmul.f32.vlgmr.msra.gmra.mxu0 %v326_v16 }
  0x48   : > { %441 = vmatpush.msra.mxu1 %v414_v42 }
  0x4a   : > { %442 = vmatpush.msra.mxu1 %v413_v45 }
  0x4c   : > { %443 = vmatpush.msra.mxu1 %v412_v47 }
  0xc4   : > { %v364_v24 = vpop.f32.mrf.mxu0 }
  0xc5   : > { %v365_v26 = vadd.f32 %v688_v21, %v364_v24 }
  0xc7   : > { %v368_v28 = vmul.f32 0.70710677, %v365_v26  ;;  %v367_v8 = vmul.f32 0.5, %v365_v26 }
  0xc9   : > { %v369_v30 = vmul.f32 %v368_v28, %v368_v28 }
  0xcb   : > { %v370_v32 = vmin.f32 %v369_v30, 16.0 }
  0xcd   : > { %v371_v34 = vmul.f32 2.1237322e-06, %v370_v32  ;;  %v382_v35 = vmul.f32 3.8918573e-05, %v370_v32 }
  0xcf   : > { %v372_v37 = vadd.f32 0.00028619796, %v371_v34  ;;  %v383_v38 = vadd.f32 0.001143296, %v382_v35 }
  0xd1   : > { %v373_v40 = vmul.f32 %v372_v37, %v370_v32  ;;  %v384_v41 = vmul.f32 %v383_v38, %v370_v32 }
  0xd3   : > { %v385_v43 = vadd.f32 0.014752088, %v384_v41  ;;  %v374_v44 = vadd.f32 0.0036580483, %v373_v40 }
  0xd5   : > { %v386_v46 = vmul.f32 %v385_v43, %v370_v32  ;;  %v375_v49 = vmul.f32 %v374_v44, %v370_v32 }
  0xd7   : > { %v387_v48 = vadd.f32 0.112945676, %v386_v46  ;;  %v376_v52 = vadd.f32 0.05243302, %v375_v49 }
  0xd9   : > { %v388_v50 = vmul.f32 %v387_v48, %v370_v32  ;;  %v377_v55 = vmul.f32 %v376_v52, %v370_v32 }
  0xdb   : > { %v389_v51 = vadd.f32 0.4994258, %v388_v50  ;;  %v378_v56 = vadd.f32 0.18741608, %v377_v55 }
  0xdd   : > { %v390_v53 = vmul.f32 %v389_v51, %v370_v32  ;;  %v379_v58 = vmul.f32 %v378_v56, %v370_v32 }
  0xdf   : > { %v391_v54 = vadd.f32 1.0, %v390_v53  ;;  %v380_v62 = vadd.f32 1.1283791, %v379_v58 }
  0xe1   : > { %690 = vrcp.f32 %v391_v54  ;;  %v403_v61 = vand.u32 2147483648, %v391_v54  ;;  %v401_v0 = vand.u32 2147483647, %v391_v54  ;;  %vm397_vm1 = vweird.f32 %v391_v54 }
  0xe2   : > { %v381_v3 = vmul.f32 %v380_v62, %v368_v28 }
  0xe3   : > { %v404_v2 = vor.u32 1.1754944e-38, %v403_v61  ;;  %vm402_vm3 = vcmp.eq.f32.partialorder %v401_v0, 8.507059e+37 }
  0xe7   : > { %v691_v57 = vpop.eup %690 }
  0xe8   : > { %v393_v59 = vmul.f32 %v691_v57, %v391_v54  ;;  %vm398_vm0 = vweird.f32 %v691_v57 }
  0xe9   : > { %vm399_vm2 = vmor %vm397_vm1, %vm398_vm0 }
  0xea   : > { %v394_v60 = vsub.f32 1.0, %v393_v59 }
  0xec   : > { %v395_v63 = vmul.f32 %v691_v57, %v394_v60 }
  0xee   : > { %v396_v1 = vadd.f32 %v691_v57, %v395_v63 }
  0xf0   : > { %v400_v4 = vsel %vm399_vm2, %v691_v57, %v396_v1 }
  0xf1   : > { %v405_v5 = vsel %vm402_vm3, %v404_v2, %v400_v4 }
  0xf2   : > { %v406_v6 = vmul.f32 %v405_v5, %v381_v3 }
  0xf4   : > { %v598_v7 = vclamps-f32 %v406_v6, 1.0 }
  0xf6   : > { %v409_v9 = vadd.f32 1.0, %v598_v7 }
  0xf8   : > { %v410_v10 = vmul.f32 %v409_v9, %v367_v8 }
  0xfa   : > { %444 = vmatmul.f32.vlgmr.msra.gmra.mxu1 %v410_v10 }
 0x177   : > { %v445_v12 = vpop.f32.mrf.mxu1 }
 0x178   : > { %v448_v13 = vadd.f32 %v689_v11, %v445_v12 }
 0x17a   : > { %454 = vst [vmem:[%s312_s12] sm:$0xff] %v448_v13 }
 0x17b   : > { %809 = shalt.err (!%p806_p13)
}
 0x17c   : > { %613 = dma.vmem_to_hbm [thread:$0]  (%p978_p0), %s469_s13, 128, %s471_s15, %s456_s24  }
 0x17d PF: > { %s482_s16 = sand.u32 1, %s848_s18   ;;  %p627_p2 = pnand %p590_p6, %p985_p5 }
 0x17e   : > { %s483_s8 = scalar_lea.sflag [#allocation5], %s482_s16 }
 0x17f   : > { %p628_p4 = pneg %p627_p2 }
 0x181   : > { %843 = dma.done.wait (%p628_p4), %s483_s8, 128  }
 0x182   : > { %845 = vsyncadd (%p628_p4), %s483_s8, 4294967168  ;;  %s22_s23 = sadd.s32 1, %s868_s23   ;;  %s1072_s18 = smov %s852_s19 }
 0x183   : > { %p19_p7 = scmp.ge.s32.totalorder %s22_s23, 4   ;;  %s1073_s19 = smov %s856_s20 }
 0x184   : > { %s1074_s20 = smov %s983_s28  ;;  %s1075_s21 = smov %s864_s22 }
 0x185   : > { %s1076_s22 = smov %s1078_s14  ;;  %21 = sbr.rel (!%p19_p7) target bundleno = 7 (0x7), region = 106 }
 0x18a   :  { %489 = vsyncpa [#allocation4], 1 }
 0x18b   :  { %491 = vsyncpa [#allocation4 + $0x1], 1 }
 0x18c   :  { %492 = vsyncpa [#allocation7], 1 }
 0x18d   :  { %493 = vsyncpa [#allocation5], 1 }
 0x18e   :  { %495 = vsyncpa [#allocation5 + $0x1], 1 }

</bundles_post_ra>
